<compile_context>
chip_gen: v6e
topology: v6e:2x2x1
jax: 0.10.0
libtpu: 0.0.40
codegen_flags: <defaults>
</compile_context>

<pallas_src>
import functools
import math

import jax
import jax.numpy as jnp
from jax.experimental import pallas as pl
from jax.experimental.pallas import tpu as pltpu

_LANE = 128


def _round_up(x, m):
    return ((x + m - 1) // m) * m


# ----------------------------- Pallas kernel ------------------------------- #

def _matmul_bias_kernel(x_ref, w_ref, b_ref, o_ref, acc_ref, *, apply_relu):
    """Tiled GEMM with fused bias (+ optional ReLU).

    Grid = (M_tiles, N_tiles, K_tiles).  Correctness requires the K
    (reduction) axis to be LAST and marked "arbitrary": the f32 scratch
    accumulator and the output block are resident across K."""
    k = pl.program_id(2)
    prod = jnp.dot(x_ref[...], w_ref[...], preferred_element_type=jnp.float32)

    @pl.when(k == 0)
    def _():                      # first K step: write, no zero-init pass
        acc_ref[...] = prod

    @pl.when(k > 0)
    def _():
        acc_ref[...] += prod

    @pl.when(k == pl.num_programs(2) - 1)
    def _():
        out = acc_ref[...] + b_ref[...]
        if apply_relu:
            out = jnp.maximum(out, 0.0)
        o_ref[...] = out.astype(o_ref.dtype)


def _gemm_bias(x, w, b, *, tm, tn, tk, out_dtype, apply_relu, vmem_limit):
    """act( x @ w + b ) for already padded / tile-aligned operands.

    x: (Mp, Kp) compute dtype, w: (Kp, Np) compute dtype, b: (1, Np) f32.
    Output: (Mp, Np) `out_dtype` (accumulation is always f32)."""
    Mp, Kp = x.shape
    Kp2, Np = w.shape
    assert Kp2 == Kp and b.shape == (1, Np)
    assert Mp % tm == 0 and Np % tn == 0 and Kp % tk == 0, (Mp, Np, Kp, tm, tn, tk)

    kernel = functools.partial(_matmul_bias_kernel, apply_relu=apply_relu)
    return pl.pallas_call(
        kernel,
        out_shape=jax.ShapeDtypeStruct((Mp, Np), out_dtype),
        grid_spec=pltpu.PrefetchScalarGridSpec(
            num_scalar_prefetch=0,
            grid=(Mp // tm, Np // tn, Kp // tk),
            in_specs=[
                pl.BlockSpec((tm, tk), lambda i, j, k: (i, k)),
                pl.BlockSpec((tk, tn), lambda i, j, k: (k, j)),
                pl.BlockSpec((1, tn), lambda i, j, k: (0, j)),
            ],
            out_specs=pl.BlockSpec((tm, tn), lambda i, j, k: (i, j)),
            scratch_shapes=[pltpu.VMEM((tm, tn), jnp.float32)],
        ),
        compiler_params=pltpu.CompilerParams(
            dimension_semantics=("parallel", "parallel", "arbitrary"),
            vmem_limit_bytes=int(vmem_limit)),
    )(x, w, b)


# ------------------------- tile / VMEM planning ---------------------------- #

def _vmem_budget_bytes():
    """Per-generation VMEM budget (leaves headroom for internal scratch)."""
    phys = 64 * 1024 * 1024                       # conservative default (v7x)
    try:
        phys = int(pltpu.get_tpu_info().vmem_capacity_bytes)
    except Exception:
        pass
    return min(int(phys * 3 // 4), 100 * 1024 * 1024)


def _gemm_vmem_bytes(tm, tn, tk, in_isz, out_isz):
    return (2 * (tm * tk + tk * tn) * in_isz      # double-buffered A, B tiles
            + 2 * tn * 4                          # bias tile
            + 2 * tm * tn * out_isz               # double-buffered output tile
            + tm * tn * 4)                        # f32 accumulator scratch


def _pair_vmem_bytes(tm, ts, td, isz):
    enc = _gemm_vmem_bytes(tm, td, ts, isz, isz)  # encoder: N=dict, K=act, bf16 out
    dec = _gemm_vmem_bytes(tm, ts, td, isz, 4)    # decoder: N=act, K=dict, f32 out
    return max(enc, dec)


def _maybe_split_for_megacore(tm, Mp, tn, Np):
    """Guarantee >=2 blocks on a parallel axis when possible (v7x: 2 TCs)."""
    if Mp // tm >= 2 or Np // tn >= 2:
        return tn
    half = tn // 2
    if half >= _LANE and half % _LANE == 0 and Np % half == 0:
        return half
    return tn


# -------------------------- one-time parameter prep ------------------------ #

def prepare_crosscoder_params(w_enc_list, b_enc, w_dec_list, b_dec_list, *,
                              compute_dtype=jnp.bfloat16,
                              tile_m=512, tile_dict=1024, tile_act=1024,
                              auto_grow=True):
    """Pre-cast + pre-pad weights/biases once and pick tile sizes.

    Call once per parameter set (not per forward step)."""
    act_dims = [int(w.shape[0]) for w in w_enc_list]
    S = int(sum(act_dims))                 # concatenated activation dim
    D = int(w_enc_list[0].shape[1])        # dict size
    isz = jnp.dtype(compute_dtype).itemsize
    sub = max(8, 32 // isz)                # sublane granularity (16 for bf16)

    budget = _vmem_budget_bytes()
    target = int(budget * 0.8)             # 20% headroom for Mosaic scratch

    tm = _round_up(max(int(tile_m), sub), sub)
    ts = _round_up(min(int(tile_act), _round_up(S, _LANE)), _LANE)
    td = _round_up(min(int(tile_dict), _round_up(D, _LANE)), _LANE)

    # Shrink requested tiles until they fit the per-generation budget.
    for _ in range(64):
        if _pair_vmem_bytes(tm, ts, td, isz) <= target:
            break
        if td >= ts and td >= tm and td > _LANE:
            td = _round_up(max(td // 2, _LANE), _LANE)
        elif ts >= tm and ts > _LANE:
            ts = _round_up(max(ts // 2, _LANE), _LANE)
        elif tm > sub:
            tm = _round_up(max(tm // 2, sub), sub)
        else:
            break

    # Grow tiles while VMEM allows (fewer grid steps / output RMW passes,
    # less weight re-streaming).  v5e/v6e (128 MiB) benefit most.
    if auto_grow:
        ts_cap = min(2048, _round_up(S, _LANE))
        td_cap = min(2048, _round_up(D, _LANE))
        tm_cap = 1024
        for _ in range(16):
            grew = False
            if td * 2 <= td_cap and _pair_vmem_bytes(tm, ts, td * 2, isz) <= target:
                td *= 2; grew = True
            if ts * 2 <= ts_cap and _pair_vmem_bytes(tm, ts * 2, td, isz) <= target:
                ts *= 2; grew = True
            if tm * 2 <= tm_cap and _pair_vmem_bytes(tm * 2, ts, td, isz) <= target:
                tm *= 2; grew = True
            if not grew:
                break

    Sp = _round_up(S, ts)
    Dp = _round_up(D, td)

    # Zero padding: padded K rows/cols contribute exactly 0; padded N cols are
    # sliced off on return; padded M rows are sliced off on return.
    w_enc_cat = jnp.concatenate([w.astype(compute_dtype) for w in w_enc_list],
                                axis=0)                       # (S, D)
    w_enc_p = jnp.pad(w_enc_cat, ((0, Sp - S), (0, Dp - D)))
    b_enc_p = jnp.pad(jnp.asarray(b_enc, jnp.float32).reshape(1, D),
                      ((0, 0), (0, Dp - D)))

    w_dec_cat = jnp.concatenate([w.astype(compute_dtype) for w in w_dec_list],
                                axis=1)                       # (D, S)
    w_dec_p = jnp.pad(w_dec_cat, ((0, Dp - D), (0, Sp - S)))
    b_dec_cat = jnp.concatenate([jnp.asarray(b, jnp.float32)
                                 for b in b_dec_list]).reshape(1, S)
    b_dec_p = jnp.pad(b_dec_cat, ((0, 0), (0, Sp - S)))

    offsets = [0]
    for d in act_dims:
        offsets.append(offsets[-1] + d)

    return dict(
        activation_dims=act_dims, dict_size=D, S=S, Sp=Sp, Dp=Dp,
        offsets=offsets, compute_dtype=compute_dtype, sub=sub,
        tile_m=tm, tile_act=ts, tile_dict=td, vmem_limit=int(budget),
        w_enc_p=w_enc_p, b_enc_p=b_enc_p, w_dec_p=w_dec_p, b_dec_p=b_dec_p,
    )


# ------------------------------ forward pass -------------------------------- #

def crosscoder_variable_dim_forward(plan, x_list):
    """Forward pass of CrossCoderVariableDim (output_features=False).

    Args:
      plan: output of prepare_crosscoder_params.
      x_list: list, x_list[l] has shape (batch, act_dim_l).
    Returns:
      (x_hat_list, f): x_hat_list[l] is (batch, act_dim_l) float32,
      f is (batch, dict_size) in the plan's compute dtype (bf16)."""
    cd = plan["compute_dtype"]
    sub = plan["sub"]
    S, Sp, Dp, D = plan["S"], plan["Sp"], plan["Dp"], plan["dict_size"]
    ts, td = plan["tile_act"], plan["tile_dict"]
    vmem_limit = plan["vmem_limit"]

    M = int(x_list[0].shape[0])
    tm = min(plan["tile_m"], _round_up(M, sub))
    Mp = _round_up(M, tm)

    x_cat = jnp.concatenate([x.astype(cd) for x in x_list], axis=1)   # (M, S)
    x_p = jnp.pad(x_cat, ((0, Mp - M), (0, Sp - S)))

    # Encoder: f = ReLU(x_cat @ W_enc_cat + b_enc), emitted in bf16 so the
    # decoder consumes it directly (no f32 round-trip, re-cast or re-pad).
    tn_enc = _maybe_split_for_megacore(tm, Mp, td, Dp)
    f_p = _gemm_bias(x_p, plan["w_enc_p"], plan["b_enc_p"],
                     tm=tm, tn=tn_enc, tk=ts, out_dtype=cd,
                     apply_relu=True, vmem_limit=vmem_limit)

    # Decoder: x_hat_cat = f @ W_dec_cat + b_dec_cat (one N-concatenated GEMM).
    tn_dec = _maybe_split_for_megacore(tm, Mp, ts, Sp)
    xhat_p = _gemm_bias(f_p, plan["w_dec_p"], plan["b_dec_p"],
                        tm=tm, tn=tn_dec, tk=td, out_dtype=jnp.float32,
                        apply_relu=False, vmem_limit=vmem_limit)

    offsets = plan["offsets"]
    x_hat_list = [xhat_p[:M, offsets[l]:offsets[l + 1]]
                  for l in range(len(offsets) - 1)]
    return x_hat_list, f_p[:M, :D]


# -------------------------- deterministic param init ----------------------- #

def init_crosscoder_params(key, activation_dims, dict_size):
    """Mirrors CrossCoderVariableDim.__init__ (init_with_transpose=True):
    per-layer encoder weight E_l ~ kaiming_uniform on (act_dim_l, dict_size)
    (fan_in = dict_size), decoder weight W_dec_l = E_l.T, zero biases."""
    w_enc_list, w_dec_list, b_dec_list = [], [], []
    bound = math.sqrt(2.0) * math.sqrt(3.0 / dict_size)
    for d in activation_dims:
        key, subkey = jax.random.split(key)
        e = jax.random.uniform(subkey, (d, dict_size), jnp.float32, -bound, bound)
        w_enc_list.append(e)
        w_dec_list.append(e.T)
        b_dec_list.append(jnp.zeros((d,), jnp.float32))
    b_enc = jnp.zeros((dict_size,), jnp.float32)
    return w_enc_list, b_enc, w_dec_list, b_dec_list


# ------------------------------ pure-JAX reference -------------------------- #

def _reference_encode(x_list, w_enc_list, b_enc, compute_dtype):
    cd = compute_dtype
    f_sum = sum(jnp.dot(x.astype(cd), w.astype(cd),
                        preferred_element_type=jnp.float32)
                for x, w in zip(x_list, w_enc_list))
    return jnp.maximum(f_sum + b_enc.astype(jnp.float32), 0.0)


def _reference_decode(f, w_dec_list, b_dec_list, compute_dtype):
    cd = compute_dtype
    return [jnp.dot(f.astype(cd), w.astype(cd),
                    preferred_element_type=jnp.float32) + b.astype(jnp.float32)
            for w, b in zip(w_dec_list, b_dec_list)]


# ----------------------------------- main ----------------------------------- #

if __name__ == "__main__":
    activation_dims = [96, 160]   # layers with different activation dims
    dict_size = 512
    batch = 16

    key = jax.random.PRNGKey(0)
    key, k_params = jax.random.split(key)
    w_enc_list, b_enc, w_dec_list, b_dec_list = init_crosscoder_params(
        k_params, activation_dims, dict_size)

    x_list = []
    for d in activation_dims:
        key, subkey = jax.random.split(key)
        x_list.append(jax.random.normal(subkey, (batch, d), jnp.float32))

    f_ref = _reference_encode(x_list, w_enc_list, b_enc, jnp.bfloat16)

    # (1) Small explicit tiles so the toy shapes exercise multi-tile
    #     (M, N, K) grids in both GEMMs.
    plan_small = prepare_crosscoder_params(
        w_enc_list, b_enc, w_dec_list, b_dec_list,
        compute_dtype=jnp.bfloat16, tile_m=128, tile_dict=256, tile_act=128,
        auto_grow=False)
    x_hat_list, f = crosscoder_variable_dim_forward(plan_small, x_list)
    x_hat_list = [jax.block_until_ready(xh) for xh in x_hat_list]
    f = jax.block_until_ready(f)

    # f is bf16 (one extra rounding vs the f32 reference) -> 2e-2 tolerance.
    assert jnp.allclose(f.astype(jnp.float32), f_ref, atol=2e-2, rtol=2e-2), \
        float(jnp.max(jnp.abs(f.astype(jnp.float32) - f_ref)))
    x_hat_ref = _reference_decode(f, w_dec_list, b_dec_list, jnp.bfloat16)
    for xh, xr in zip(x_hat_list, x_hat_ref):
        assert jnp.allclose(xh, xr, atol=3e-3, rtol=3e-3), \
            float(jnp.max(jnp.abs(xh - xr)))

    # (2) Production defaults: VMEM-budgeted tiles (auto-grow) + megacore
    #     N-split when a parallel axis would collapse to a single block.
    plan_default = prepare_crosscoder_params(
        w_enc_list, b_enc, w_dec_list, b_dec_list, compute_dtype=jnp.bfloat16)
    x_hat_list2, f2 = crosscoder_variable_dim_forward(plan_default, x_list)
    x_hat_list2 = [jax.block_until_ready(xh) for xh in x_hat_list2]
    f2 = jax.block_until_ready(f2)

    assert jnp.allclose(f2.astype(jnp.float32), f_ref, atol=2e-2, rtol=2e-2)
    x_hat_ref2 = _reference_decode(f2, w_dec_list, b_dec_list, jnp.bfloat16)
    for xh, xr in zip(x_hat_list2, x_hat_ref2):
        assert jnp.allclose(xh, xr, atol=3e-3, rtol=3e-3)

    print("KERNEL_OK")
</pallas_src>

<mosaic_0001>
module attributes {stable_mosaic.version = 11 : i64} {
  func.func @_matmul_bias_kernel(%arg0: i32, %arg1: i32, %arg2: i32, %arg3: memref<16x128xbf16, #tpu.memory_space<vmem>>, %arg4: memref<128x256xbf16, #tpu.memory_space<vmem>>, %arg5: memref<1x256xf32, #tpu.memory_space<vmem>>, %arg6: memref<16x256xbf16, #tpu.memory_space<vmem>>, %arg7: memref<16x256xf32, #tpu.memory_space<vmem>>) attributes {dimension_semantics = [#tpu.dimension_semantics<parallel>, #tpu.dimension_semantics<parallel>, #tpu.dimension_semantics<arbitrary>], iteration_bounds = array<i64: 1, 2, 2>, scalar_prefetch = 0 : i64, scratch_operands = 1 : i64, tpu.core_type = #tpu.core_type<tc>, window_params = [{transform_indices = @transform_0, window_bounds = array<i64: 16, 128>}, {transform_indices = @transform_1, window_bounds = array<i64: 128, 256>}, {transform_indices = @transform_2, window_bounds = array<i64: 1, 256>}, {transform_indices = @transform_3, window_bounds = array<i64: 16, 256>}]} {
    %c0 = arith.constant 0 : index
    %c0_0 = arith.constant 0 : index
    %0 = vector.load %arg3[%c0, %c0_0] : memref<16x128xbf16, #tpu.memory_space<vmem>>, vector<16x128xbf16>
    %c0_1 = arith.constant 0 : index
    %c0_2 = arith.constant 0 : index
    %1 = vector.load %arg4[%c0_1, %c0_2] : memref<128x256xbf16, #tpu.memory_space<vmem>>, vector<128x256xbf16>
    %cst = arith.constant dense<0.000000e+00> : vector<16x256xf32>
    %2 = tpu.matmul %0, %1, %cst {dimension_numbers = #tpu.dot_dimension_numbers<[1], [0], [0], [1], [0, 0, 1, 1], [], []>} : vector<16x128xbf16>, vector<128x256xbf16>, vector<16x256xf32> -> vector<16x256xf32>
    %c0_i32 = arith.constant 0 : i32
    %3 = arith.cmpi eq, %arg2, %c0_i32 : i32
    %4 = arith.extui %3 : i1 to i32
    %c0_i32_3 = arith.constant 0 : i32
    %5 = arith.cmpi ne, %4, %c0_i32_3 : i32
    scf.if %5 {
      %c0_7 = arith.constant 0 : index
      %c0_8 = arith.constant 0 : index
      %12 = vector.load %arg7[%c0_7, %c0_8] : memref<16x256xf32, #tpu.memory_space<vmem>>, vector<16x256xf32>
      tpu.vector_store %arg7[%c0_7, %c0_8], %2 {strides = array<i32>} : memref<16x256xf32, #tpu.memory_space<vmem>>, vector<16x256xf32>,
    } else {
    }
    %c0_i32_4 = arith.constant 0 : i32
    %6 = arith.cmpi sgt, %arg2, %c0_i32_4 : i32
    %7 = arith.extui %6 : i1 to i32
    %c0_i32_5 = arith.constant 0 : i32
    %8 = arith.cmpi ne, %7, %c0_i32_5 : i32
    scf.if %8 {
      %c0_7 = arith.constant 0 : index
      %c0_8 = arith.constant 0 : index
      %12 = vector.load %arg7[%c0_7, %c0_8] : memref<16x256xf32, #tpu.memory_space<vmem>>, vector<16x256xf32>
      %13 = arith.addf %12, %2 : vector<16x256xf32>
      %c0_9 = arith.constant 0 : index
      %c0_10 = arith.constant 0 : index
      %14 = vector.load %arg7[%c0_9, %c0_10] : memref<16x256xf32, #tpu.memory_space<vmem>>, vector<16x256xf32>
      tpu.vector_store %arg7[%c0_9, %c0_10], %13 {strides = array<i32>} : memref<16x256xf32, #tpu.memory_space<vmem>>, vector<16x256xf32>,
    } else {
    }
    %c1_i32 = arith.constant 1 : i32
    %9 = arith.cmpi eq, %arg2, %c1_i32 : i32
    %10 = arith.extui %9 : i1 to i32
    %c0_i32_6 = arith.constant 0 : i32
    %11 = arith.cmpi ne, %10, %c0_i32_6 : i32
    scf.if %11 {
      %c0_7 = arith.constant 0 : index
      %c0_8 = arith.constant 0 : index
      %12 = vector.load %arg7[%c0_7, %c0_8] : memref<16x256xf32, #tpu.memory_space<vmem>>, vector<16x256xf32>
      %c0_9 = arith.constant 0 : index
      %c0_10 = arith.constant 0 : index
      %13 = vector.load %arg5[%c0_9, %c0_10] : memref<1x256xf32, #tpu.memory_space<vmem>>, vector<1x256xf32>
      %14 = vector.broadcast %13 : vector<1x256xf32> to vector<16x256xf32>
      %15 = arith.addf %12, %14 : vector<16x256xf32>
      %cst_11 = arith.constant 0.000000e+00 : f32
      %16 = vector.broadcast %cst_11 : f32 to vector<16x256xf32>
      %17 = arith.maximumf %15, %16 : vector<16x256xf32>
      %18 = arith.truncf %17 : vector<16x256xf32> to vector<16x256xbf16>
      %c0_12 = arith.constant 0 : index
      %c0_13 = arith.constant 0 : index
      %19 = vector.load %arg6[%c0_12, %c0_13] : memref<16x256xbf16, #tpu.memory_space<vmem>>, vector<16x256xbf16>
      tpu.vector_store %arg6[%c0_12, %c0_13], %18 {strides = array<i32>} : memref<16x256xbf16, #tpu.memory_space<vmem>>, vector<16x256xbf16>,
    } else {
    }
    return
  }
  func.func @transform_0(%arg0: i32, %arg1: i32, %arg2: i32) -> (i32, i32) {
    %c0_i32 = arith.constant 0 : i32
    return %arg0, %arg2 : i32, i32
  }
  func.func @transform_1(%arg0: i32, %arg1: i32, %arg2: i32) -> (i32, i32) {
    %c0_i32 = arith.constant 0 : i32
    return %arg2, %arg1 : i32, i32
  }
  func.func @transform_2(%arg0: i32, %arg1: i32, %arg2: i32) -> (i32, i32) {
    %c0_i32 = arith.constant 0 : i32
    %c0_i32_0 = arith.constant 0 : i32
    return %c0_i32, %arg1 : i32, i32
  }
  func.func @transform_3(%arg0: i32, %arg1: i32, %arg2: i32) -> (i32, i32) {
    %c0_i32 = arith.constant 0 : i32
    return %arg0, %arg1 : i32, i32
  }
}

</mosaic_0001>

<bundles_post_ra>
// kernel: tpu_custom_call.1
= control target key start
LH: loop header
LB: loop body
LE: loop exit
PB: predicated region body
PF: predicated region fallthrough
CT: control target
= control target key end

     0   :  { %s1527_s0 = inlined_call_operand.hbm [shape: bf16[16,256], index: 0, kind: input, shape index: {}]   ;;  %s1528_s1 = inlined_call_operand.hbm [shape: bf16[256,512], index: 1, kind: input, shape index: {}]   ;;  %s1529_s2 = inlined_call_operand.hbm [shape: f32[1,512], index: 2, kind: input, shape index: {}]   ;;  %s1530_s3 = inlined_call_operand.hbm [shape: bf16[16,512], index: 3, kind: output, shape index: {}]  }
   0x1   :  { %1536 = sst [smem:[#allocation20_spill]] %s1527_s0 }
   0x2   :  { %1537 = sst [smem:[#allocation21_spill]] %s1528_s1 }
   0x3   :  { %1538 = sst [smem:[#allocation22_spill]] %s1529_s2 }
   0x4   :  { %1539 = sst [smem:[#allocation23_spill]] %s1530_s3 }
   0x5   :  { %8 = vsyncpa [#allocation4], 0 }
   0x6   :  { %10 = vsyncpa [#allocation4 + $0x1], 0 }
   0x7   :  { %11 = vsyncpa [#allocation7], 0 }
   0x8   :  { %13 = vsyncpa [#allocation7 + $0x1], 0 }
   0x9   :  { %14 = vsyncpa [#allocation5], 0 }
   0xa   :  { %16 = vsyncpa [#allocation5 + $0x1], 0  ;;  %s1161_s12 = smov 0   ;;  %s1163_s13 = smov 0  }
   0xb   :  { %s1165_s14 = smov 0   ;;  %s1167_s15 = smov 0  }
   0xc   :  { %s1169_s16 = smov 0   ;;  %s1171_s17 = smov 0  }
   0xd   :  { %s1173_s18 = smov 0   ;;  %s1175_s19 = smov 0  }
   0xe   :  { %s1177_s20 = smov 0   ;;  %s1179_s21 = smov 0  }
   0xf   :  { %s1181_s22 = smov 0   ;;  %s1183_s23 = smov 0  }
  0x10   :  { %s1185_s24 = smov 0   ;;  %s1187_s25 = smov 0  }
  0x11 LB: > { %1540 = sst [smem:[#allocation14_spill]] %s1074_s12  ;;  %s34_s26 = sadd.s32 1, %s1118_s23  ;;  %s1126_s25 = sphi %s1187_s25, %s22_s25   ;;  %s1122_s24 = sphi %s1185_s24, %s1585_s24   ;;  %s1118_s23 = sphi %s1183_s23, %s1584_s23   ;;  %s1114_s22 = sphi %s1181_s22, %s1583_s22   ;;  %s1110_s21 = sphi %s1179_s21, %s1582_s21   ;;  %s1106_s20 = sphi %s1177_s20, %s1581_s20   ;;  %s1102_s19 = sphi %s1175_s19, %s1580_s19   ;;  %s1098_s18 = sphi %s1173_s18, %s1579_s18   ;;  %s1094_s17 = sphi %s1171_s17, %s1578_s17   ;;  %s1090_s16 = sphi %s1169_s16, %s1577_s16   ;;  %s1086_s15 = sphi %s1167_s15, %s1576_s15   ;;  %s1082_s14 = sphi %s1165_s14, %s1575_s14   ;;  %s1078_s13 = sphi %s1163_s13, %s1574_s13   ;;  %s1074_s12 = sphi %s1161_s12, %s1571_s12  }
  0x12   : > { %1541 = sst [smem:[#allocation15_spill]] %s1078_s13  ;;  %s37_s27 = sadd.s32 1, %s1122_s24 }
  0x13   : > { %1542 = sst [smem:[#allocation16_spill]] %s1110_s21  ;;  %p35_p0 = scmp.ge.s32.totalorder %s34_s26, 2 }
  0x14   : > { %1543 = sst [smem:[#allocation17_spill]] %s1114_s22  ;;  %p58_p1 = scmp.eq.s32.totalorder %s1126_s25, 0 }
  0x15   : > { %s78_s28 = sadd.s32 1, %s1094_s17  ;;  %p85_p2 = scmp.ne.s32.totalorder %s1094_s17, %s1090_s16 }
  0x16   : > { %s1587_s26 = smov (%p35_p0, %s34_s26), 0  ;;  %s1589_s27 = smov (!%p35_p0, %s37_s27), %s1122_s24 }
  0x17   : > { %1544 = sst [smem:[#allocation18_spill]] %s1587_s26  ;;  %s1242_s29 = ssub.s32 %s1118_s23, %s1587_s26 }
  0x18   : > { %p1246_p3 = por %p85_p2, %p58_p1  ;;  %p39_p4 = scmp.ge.s32.totalorder %s1589_s27, 2 }
  0x19   : > { %p48_p5 = scmp.eq.s32.totalorder %s1242_s29, 0  ;;  %p91_p6 = scmp.ne.s32.totalorder %s1090_s16, %s1086_s15 }
  0x1a   : > { %s1591_s27 = smov (%p39_p4, %s1589_s27), 0  ;;  %p1535_p7 = scmp.lt.s32.totalorder %s1126_s25, 4 }
  0x1b   : > { %1546 = sst [smem:[#allocation19_spill]] %s1591_s27  ;;  %s674_s4 = sshll.u32 %s1118_s23, 6 }
  0x1c   : > { %s1259_s5 = ssub.s32 %s1122_s24, %s1591_s27  ;;  %s192_s7 = sand.u32 1, %s1126_s25  }
  0x1d   : > { %s75_s6 = sor.u32 %s1259_s5, %s1242_s29  ;;  %s194_s8 = sand.u32 1, %s1094_s17  }
  0x1e   : > { %p76_p8 = scmp.eq.s32.totalorder %s75_s6, 0  ;;  %s677_s9 = sshll.u32 %s1122_s24, 1 }
  0x1f   : > { %s675_s11 = sshll.u32 %s194_s8, 7  ;;  %s203_s26 = sadd.s32 %s677_s9, %s674_s4 }
  0x20   : > { %s1267_s10 = scalar_select %p76_p8, %s1094_s17, %s78_s28  }
  0x21   : > { %s679_s3 = sshll.u32 %s203_s26, 6  ;;  %s1547_s1 = sld [smem:[#allocation21_spill]] }
  0x22   : > { %s196_s12 = scalar_lea.vmem [#allocation6], %s675_s11  ;;  %p1278_p9 = pnand %p1535_p7, %p1246_p3 }
  0x23   : > { %s206_s13 = sshll.u32 %s196_s12, 4  ;;  %p683_p10 = scmp.ge.s32.totalorder %s1126_s25, 1  ;;  %s207_s13 = int_to_ptr.vmem [resolvable:$true] %s206_s13 }
  0x24   : > { %s1283_s28 = scalar_lea.sflag [#allocation7], %s192_s7  ;;  %p892_p11 = pneg %p1278_p9 }
  0x25   : > { %s903_s26 = scalar_lea.vmem %s207_s13, 2048 }
  0x26   : > { %p904_p12 = scmp.ne.s32.totalorder %s207_s13, %s903_s26 }
  0x27   : > { %s205_s2 = scalar_lea.hbm %s1547_s1, %s679_s3  ;;  %s1128_s3 = smov [#allocation6]  }
  0x28   : > { %p906_p13 = pnand %p904_p12, %p892_p11  ;;  %s908_s21 = sshll.u32 %s1128_s3, 4  ;;  %s909_s21 = int_to_ptr.vmem [resolvable:$false] %s908_s21 }
  0x29   : > { %s910_s12 = scalar_lea.vmem %s909_s21, 4096  ;;  %p911_p2 = scmp.lt.s32.totalorder %s207_s13, %s909_s21 }
  0x2a   : > { %p907_p0 = pneg %p906_p13  ;;  %p912_p4 = scmp.lt.s32.totalorder %s910_s12, %s903_s26 }
  0x2c   : > { %p913_p3 = por %p912_p4, %p911_p2 }
  0x2e   : > { %p914_p8 = pnand %p913_p3, %p907_p0 }
  0x30   : > { %917 = shalt.err (!%p914_p8)
}
  0x31   : > { %s1129_s22 = smov 256   ;;  %s1130_s30 = smov 128  }
  0x32   : > { %s1131_s6 = smov 8   ;;  %p233_p11 = scmp.lt.s32.totalorder %s1126_s25, 5 }
  0x33   : > { %734 = dma.hbm_to_vmem [thread:$0]  (!%p1278_p9), %s205_s2, 2048, %s207_s13, %s1283_s28, %s1129_s22, %s1130_s30, %s1131_s6  }
  0x34   : > { %p1294_p12 = pnand %p683_p10, %p233_p11  ;;  %s50_s8 = sadd.s32 1, %s1106_s20 }
  0x35   : > { %p57_p13 = scmp.ne.s32.totalorder %s1106_s20, %s1102_s19  ;;  %p63_p2 = scmp.ne.s32.totalorder %s1102_s19, %s1098_s18 }
  0x36   : > { %s1304_s9 = scalar_select %p48_p5, %s1106_s20, %s50_s8  }
  0x37   : > { %p59_p0 = por %p58_p1, %p57_p13  ;;  %s169_s11 = sand.u32 1, %s1106_s20  }
  0x38   : > { %s1550_s0 = sld [smem:[#allocation20_spill]]  ;;  %s673_s13 = sshll.u32 %s169_s11, 3 }
  0x39   : > { %p1318_p9 = pnand %p1535_p7, %p59_p0  ;;  %s173_s21 = scalar_lea.vmem [#allocation3], %s673_s13 }
  0x3a   : > { %s182_s29 = sshll.u32 %s173_s21, 4  ;;  %s170_s12 = scalar_lea.sflag [#allocation4], %s169_s11  ;;  %s183_s29 = int_to_ptr.vmem [resolvable:$true] %s182_s29 }
  0x3b   : > { %p920_p5 = pneg %p1318_p9  ;;  %s931_s22 = scalar_lea.vmem %s183_s29, 128 }
  0x3c   : > { %p932_p10 = scmp.ne.s32.totalorder %s183_s29, %s931_s22  ;;  %s1132_s6 = smov [#allocation3]  }
  0x3d   : > { %s936_s8 = sshll.u32 %s1132_s6, 4  ;;  %s937_s8 = int_to_ptr.vmem [resolvable:$false] %s936_s8 }
  0x3e   : > { %s181_s2 = scalar_lea.hbm %s1550_s0, %s674_s4  ;;  %p934_p4 = pnand %p932_p10, %p920_p5 }
  0x3f   : > { %s938_s4 = scalar_lea.vmem %s937_s8, 256  ;;  %p939_p8 = scmp.lt.s32.totalorder %s183_s29, %s937_s8 }
  0x40   : > { %p935_p3 = pneg %p934_p4  ;;  %p940_p11 = scmp.lt.s32.totalorder %s938_s4, %s931_s22 }
  0x42   : > { %p941_p13 = por %p940_p11, %p939_p8 }
  0x44   : > { %p942_p0 = pnand %p941_p13, %p935_p3 }
  0x46   : > { %945 = shalt.err (!%p942_p0)
}
  0x47   : > { %s1133_s26 = smov 64   ;;  %s1552_s11 = sld [smem:[#allocation15_spill]] }
  0x48   : > { %s1553_s27 = sld [smem:[#allocation14_spill]]  ;;  %s1134_s13 = smov 4  }
  0x49   : > { %731 = dma.hbm_to_vmem [thread:$0]  (!%p1318_p9), %s181_s2, 128, %s183_s29, %s170_s12, %s1130_s30, %s1133_s26, %s1134_s13  }
  0x4a   : > { %s1328_s21 = sadd.s32 4294967295, %s1126_s25   ;;  %s670_s22 = sadd.s32 4294967294, %s1126_s25  }
  0x4b   : > { %p64_p5 = scmp.eq.s32.totalorder %s1328_s21, 0  ;;  %p102_p10 = scmp.eq.s32.totalorder %s1259_s5, 0 }
  0x4c   : > { %s104_s6 = sadd.s32 1, %s1082_s14  ;;  %p143_p11 = scmp.eq.s32.totalorder %s1328_s21, 3 }
  0x4d   : > { %p1337_p4 = por %p64_p5, %p63_p2  ;;  %p1344_p3 = por %p91_p6, %p64_p5 }
  0x4e   : > { %s1349_s30 = scalar_select %p102_p10, %s1082_s14, %s104_s6  }
  0x4f   : > { %p111_p9 = scmp.ne.s32.totalorder %s1082_s14, %s1552_s11  ;;  %p117_p8 = scmp.ne.s32.totalorder %s1552_s11, %s1553_s27 }
  0x50   : > { %p149_p13 = scmp.eq.s32.totalorder %s670_s22, 3  ;;  %s218_s2 = sand.u32 1, %s1082_s14  }
  0x51   : > { %p113_p0 = por %p111_p9, %p58_p1  ;;  %p1358_p7 = por %p117_p8, %p64_p5 }
  0x52   : > { %p1362_p2 = por %p143_p11, %p111_p9  ;;  %p1366_p6 = por %p149_p13, %p117_p8 }
  0x53   : > { %s716_s29 = sshll.u32 %s1122_s24, 5  ;;  %s680_s12 = sshll.u32 %s218_s2, 1 }
  0x54   : > { %s1558_s15 = scalar_select %p1366_p6, 1, 0 }
  0x55   : > { %s1559_s11 = sld [smem:[#allocation22_spill]]  ;;  %p1560_p1 = scmp.lt.s32.totalorder %s1126_s25, 4 }
  0x56   : > { %s220_s22 = scalar_lea.vmem [#allocation8], %s680_s12  ;;  %s1135_s2 = smov [#allocation8]  }
  0x57   : > { %p1377_p5 = pnand %p1560_p1, %p113_p0  ;;  %s228_s6 = sshll.u32 %s220_s22, 4  ;;  %s229_s6 = int_to_ptr.vmem [resolvable:$true] %s228_s6 }
  0x58   : > { %s959_s0 = scalar_lea.vmem %s229_s6, 32  ;;  %s964_s1 = sshll.u32 %s1135_s2, 4  ;;  %s965_s1 = int_to_ptr.vmem [resolvable:$false] %s964_s1 }
  0x59   : > { %p948_p10 = pneg %p1377_p5  ;;  %p960_p9 = scmp.ne.s32.totalorder %s229_s6, %s959_s0 }
  0x5a   : > { %s966_s4 = scalar_lea.vmem %s965_s1, 64  ;;  %p967_p13 = scmp.lt.s32.totalorder %s229_s6, %s965_s1 }
  0x5b   : > { %s226_s27 = scalar_lea.hbm %s1559_s11, %s716_s29  ;;  %p962_p8 = pnand %p960_p9, %p948_p10 }
  0x5c   : > { %p968_p6 = scmp.lt.s32.totalorder %s966_s4, %s959_s0 }
  0x5d   : > { %p963_p11 = pneg %p962_p8 }
  0x5e   : > { %p969_p0 = por %p968_p6, %p967_p13 }
  0x60   : > { %p970_p1 = pnand %p969_p0, %p963_p11 }
  0x62   : > { %973 = shalt.err (!%p970_p1)
}
  0x63   : > { %737 = dma.hbm_to_vmem [thread:$0]  (!%p1377_p5), %s226_s27, 32, %s229_s6, %s1283_s28  }
  0x64   : > { %237 = sbr.rel (%p1294_p12) target bundleno = 426 (0x1aa), region = 32  ;;  %s239_s29 = sand.u32 (!%p1294_p12), 1, %s1102_s19  }
  0x65   : > { %s1389_s12 = sshll.u32 (!%p1294_p12), %s239_s29, 3  ;;  %s240_s26 = scalar_lea.sflag (!%p1294_p12), [#allocation4], %s239_s29 }
  0x66   : > { %s243_s11 = scalar_lea.vmem (!%p1294_p12), [#allocation3], %s1389_s12 }
  0x69   : > { %1057 = dma.done.wait (%p1337_p4), %s240_s26, 128  }
  0x6a   : > { %1059 = vsyncadd (%p1337_p4), %s240_s26, 4294967168  ;;  %s248_s0 = sand.u32 1, %s1328_s21   ;;  %s250_s1 = sand.u32 1, %s1090_s16  }
  0x6b   : > { %s685_s28 = sshll.u32 %s250_s1, 7  ;;  %s249_s7 = scalar_lea.sflag [#allocation7], %s248_s0 }
  0x6c   : > { %s1398_s27 = scalar_lea.vmem [#allocation6], %s685_s28 }
  0x6d   : > { %1061 = dma.done.wait (%p1344_p3), %s249_s7, 2048  }
  0x6e   : > { %1063 = vsyncadd (%p1344_p3), %s249_s7, 4294965248  ;;  %s1562_s13 = sld [smem:[#allocation15_spill]] }
  0x74   : > { %s1405_s22 = sand.u32 1, %s1562_s13  }
  0x75   : > { %s686_s8 = sshll.u32 %s1405_s22, 1 }
  0x76   : > { %s1408_s6 = scalar_lea.vmem [#allocation8], %s686_s8 }
  0x77   : > { %1065 = dma.done.wait (%p1358_p7), %s249_s7, 32  }
  0x78   : > { %1067 = vsyncadd (%p1358_p7), %s249_s7, 4294967264  ;;  %s687_s21 = sshll.u32 %s1405_s22, 4  ;;  %v1136_v0 = vmov 0   ;;  %v865_v1 = vld [vmem:[%s1398_s27 + $0x74] ss:$8 sps:$4 sm:$0xff]   ;;  %s1563_s18 = sld [smem:[#allocation16_spill]] }
  0x79   : > { %437 = vmatprep.mubr.bf16.mxu0 %v1136_v0  ;;  %v867_v2 = vld [vmem:[%s1398_s27 + $0x70] ss:$8 sps:$4 sm:$0xff]   ;;  %405 = vmatprep.subr.bf16.mxu0 %v865_v1  ;;  %v868_v3 = vld [vmem:[%s1398_s27 + $0x64] ss:$8 sps:$4 sm:$0xff]   ;;  %v870_v4 = vld [vmem:[%s1398_s27 + $0x60] ss:$8 sps:$4 sm:$0xff]  }
  0x7a   : > { %406 = vmatpush1.bf16.msra.mxu0 %v867_v2  ;;  %v871_v5 = vld [vmem:[%s1398_s27 + $0x54] ss:$8 sps:$4 sm:$0xff]   ;;  %v873_v6 = vld [vmem:[%s1398_s27 + $0x50] ss:$8 sps:$4 sm:$0xff]   ;;  %v874_v7 = vld [vmem:[%s1398_s27 + $0x44] ss:$8 sps:$4 sm:$0xff]  }
  0x7b   : > { %407 = vmatprep.subr.bf16.mxu0 %v868_v3  ;;  %v876_v8 = vld [vmem:[%s1398_s27 + $0x40] ss:$8 sps:$4 sm:$0xff]   ;;  %v877_v9 = vld [vmem:[%s1398_s27 + $0x34] ss:$8 sps:$4 sm:$0xff]   ;;  %v879_v10 = vld [vmem:[%s1398_s27 + $0x30] ss:$8 sps:$4 sm:$0xff]  }
  0x7c   : > { %v880_v11 = vld [vmem:[%s1398_s27 + $0x24] ss:$8 sps:$4 sm:$0xff]   ;;  %v882_v12 = vld [vmem:[%s1398_s27 + $0x20] ss:$8 sps:$4 sm:$0xff]   ;;  %v883_v13 = vld [vmem:[%s1398_s27 + $0x14] ss:$8 sps:$4 sm:$0xff]  }
  0x7d   : > { %v885_v14 = vld [vmem:[%s1398_s27 + $0x10] ss:$8 sps:$4 sm:$0xff]   ;;  %v886_v15 = vld [vmem:[%s1398_s27 + $0x4] ss:$8 sps:$4 sm:$0xff]   ;;  %v888_v16 = vld [vmem:[%s1398_s27] ss:$8 sps:$4 sm:$0xff]  }
  0x7e   : > { %408 = vmatpush1.bf16.msra.mxu0 %v870_v4  ;;  %v889_v17 = vld [vmem:[%s243_s11] sm:$0xff]   ;;  %s1435_s3 = scalar_lea.vmem [#allocation9], %s687_s21  ;;  %p705_p7 = scmp.ne.s32.totalorder %s1563_s18, 0 }
  0x7f   : > { %409 = vmatprep.subr.bf16.mxu0 %v871_v5 }
  0x82   : > { %410 = vmatpush1.bf16.msra.mxu0 %v873_v6 }
  0x83   : > { %411 = vmatprep.subr.bf16.mxu0 %v874_v7 }
  0x86   : > { %412 = vmatpush1.bf16.msra.mxu0 %v876_v8 }
  0x87   : > { %413 = vmatprep.subr.bf16.mxu0 %v877_v9 }
  0x8a   : > { %414 = vmatpush1.bf16.msra.mxu0 %v879_v10 }
  0x8b   : > { %415 = vmatprep.subr.bf16.mxu0 %v880_v11 }
  0x8e   : > { %416 = vmatpush1.bf16.msra.mxu0 %v882_v12 }
  0x8f   : > { %417 = vmatprep.subr.bf16.mxu0 %v883_v13 }
  0x92   : > { %418 = vmatpush1.bf16.msra.mxu0 %v885_v14 }
  0x93   : > { %419 = vmatprep.subr.bf16.mxu0 %v886_v15 }
  0x96   : > { %420 = vmatpush1.bf16.msra.mxu0 %v888_v16 }
  0x99   : > { %438 = vmatmul.mubr.bf16.vlgmr.msra.gmra.mxu0 %v889_v17 }
 0x159   : > { %v439_v18 = vpop.f32.mrf.mxu0 }
 0x15b   : > { %v441_v19 = vpop.f32.mrf.mxu0  ;;  %451 = sbr.rel (%p705_p7) target bundleno = 354 (0x162), region = 48 }
 0x15d   : > { %v443_v20 = vpop.f32.mrf.mxu0 }
 0x15f   : > { %v445_v21 = vpop.f32.mrf.mxu0 }
 0x160   : > { %452 = vst [vmem:[#allocation2 + $0x10] sm:$0xff] %v439_v18  ;;  %453 = vst [vmem:[#allocation2] sm:$0xff] %v441_v19 }
 0x161   : > { %454 = vst [vmem:[#allocation2 + $0x18] sm:$0xff] %v443_v20  ;;  %455 = vst [vmem:[#allocation2 + $0x8] sm:$0xff] %v445_v21 }
 0x162 PF: > { %s1564_s2 = sld [smem:[#allocation16_spill]] }
 0x168   : > { %p706_p12 = scmp.le.s32.totalorder %s1564_s2, 0 }
 0x16a   : > { %459 = sbr.rel (%p706_p12) target bundleno = 372 (0x174), region = 52 }
 0x16f   : > { %v460_v22 = vld [vmem:[#allocation2 + $0x10] sm:$0xff]  ;;  %v461_v23 = vld [vmem:[#allocation2] sm:$0xff]  ;;  %v462_v24 = vld [vmem:[#allocation2 + $0x18] sm:$0xff] }
 0x170   : > { %v464_v25 = vadd.f32 %v460_v22, %v439_v18  ;;  %v465_v26 = vadd.f32 %v461_v23, %v441_v19  ;;  %v466_v27 = vadd.f32 %v462_v24, %v443_v20  ;;  %v463_v28 = vld [vmem:[#allocation2 + $0x8] sm:$0xff] }
 0x171   : > { %v467_v29 = vadd.f32 %v463_v28, %v445_v21 }
 0x172   : > { %468 = vst [vmem:[#allocation2 + $0x10] sm:$0xff] %v464_v25  ;;  %469 = vst [vmem:[#allocation2] sm:$0xff] %v465_v26 }
 0x173   : > { %470 = vst [vmem:[#allocation2 + $0x18] sm:$0xff] %v466_v27  ;;  %471 = vst [vmem:[#allocation2 + $0x8] sm:$0xff] %v467_v29 }
 0x174 PF: > { %s1565_s4 = sld [smem:[#allocation16_spill]] }
 0x17a   : > { %p707_p4 = scmp.ne.s32.totalorder %s1565_s4, 1 }
 0x17c   : > { %475 = sbr.rel (%p707_p4) target bundleno = 400 (0x190), region = 56 }
 0x181   : > { %v482_v30 = vlaneseq  ;;  %v480_v32 = vld [vmem:[%s1408_s6] sm:$0x3]  ;;  %v477_v36 = vld [vmem:[#allocation2] sm:$0xff]  ;;  %v478_v37 = vld [vmem:[#allocation2 + $0x18] sm:$0xff] }
 0x182   : > { %v476_v33 = vld [vmem:[#allocation2 + $0x10] sm:$0xff]  ;;  %v479_v38 = vld [vmem:[#allocation2 + $0x8] sm:$0xff] }
 0x183   : > { %v483_v31 = vshrl.u32 %v482_v30, 7 }
 0x185   : > { %v484_v34 = vsub.s32 0, %v483_v31  ;;  %v488_v35 = vsub.s32 1, %v483_v31 }
 0x187   : > { %v485_v39 = vrot.slane %v480_v32, %v484_v34  ;;  %v489_v40 = vrot.slane %v480_v32, %v488_v35 }
 0x189   : > { %v492_v41 = vadd.f32 %v485_v39, %v476_v33  ;;  %v493_v42 = vadd.f32 %v489_v40, %v477_v36  ;;  %v494_v43 = vadd.f32 %v485_v39, %v478_v37  ;;  %v495_v44 = vadd.f32 %v489_v40, %v479_v38 }
 0x18b   : > { %v496_v45 = vmax.f32 %v492_v41, 0.0  ;;  %v497_v46 = vmax.f32 %v493_v42, 0.0  ;;  %v498_v47 = vmax.f32 %v494_v43, 0.0  ;;  %v499_v48 = vmax.f32 %v495_v44, 0.0 }
 0x18d   : > { %v717_v49 = vpack.c.bf16 %v497_v46, %v496_v45  ;;  %v718_v50 = vpack.c.bf16 %v499_v48, %v498_v47 }
 0x18f   : > { %512 = vst [vmem:[%s1435_s3] sm:$0xff] %v717_v49  ;;  %513 = vst [vmem:[%s1435_s3 + $0x8] sm:$0xff] %v718_v50 }
 0x190 PF: > { %s1566_s29 = sld [smem:[#allocation17_spill]]  ;;  %s531_s28 = sshll.u32 %s1435_s3, 4  ;;  %s1450_s28 = int_to_ptr.vmem [resolvable:$true] %s531_s28 }
 0x191   : > { %s1567_s0 = sld [smem:[#allocation23_spill]]  ;;  %s515_s7 = scalar_lea.sflag [#allocation5], %s1405_s22 }
 0x192   : > { %s974_s27 = scalar_lea.vmem %s1450_s28, 256  ;;  %s1137_s13 = smov [#allocation9]  }
 0x193   : > { %p975_p3 = scmp.ne.s32.totalorder %s1450_s28, %s974_s27  ;;  %s978_s8 = sshll.u32 %s1137_s13, 4  ;;  %s979_s8 = int_to_ptr.vmem [resolvable:$false] %s978_s8 }
 0x194   : > { %s980_s6 = scalar_lea.vmem %s979_s8, 512  ;;  %p981_p10 = scmp.lt.s32.totalorder %s1450_s28, %s979_s8 }
 0x195   : > { %p976_p6 = pnand %p975_p3, %p1362_p2  ;;  %p982_p9 = scmp.lt.s32.totalorder %s980_s6, %s974_s27 }
 0x196   : > { %s719_s12 = sshll.u32 %s1566_s29, 7 }
 0x197   : > { %s1447_s1 = scalar_lea.hbm %s1567_s0, %s719_s12  ;;  %p977_p5 = pneg %p976_p6 }
 0x198   : > { %p983_p8 = por %p982_p9, %p981_p10 }
 0x19a   : > { %p984_p11 = pnand %p983_p8, %p977_p5 }
 0x19c   : > { %987 = shalt.err (!%p984_p11)
}
 0x19d   : > { %s988_s21 = scalar_lea.hbm %s1447_s1, 256  ;;  %s992_s2 = scalar_lea.hbm %s1567_s0, 512 }
 0x19e   : > { %p989_p13 = scmp.ne.s32.totalorder %s1447_s1, %s988_s21  ;;  %p993_p7 = scmp.lt.s32.totalorder %s1447_s1, %s1567_s0 }
 0x19f   : > { %p994_p12 = scmp.lt.s32.totalorder %s992_s2, %s988_s21 }
 0x1a0   : > { %p990_p0 = pnand %p989_p13, %p1362_p2 }
 0x1a1   : > { %p995_p4 = por %p994_p12, %p993_p7 }
 0x1a2   : > { %p991_p1 = pneg %p990_p0 }
 0x1a4   : > { %p996_p3 = pnand %p995_p4, %p991_p1 }
 0x1a6   : > { %999 = shalt.err (!%p996_p3)
}
 0x1a7   : > { %s1138_s12 = smov 128   ;;  %s1139_s26 = smov 256  }
 0x1a8   : > { %s1140_s11 = smov 8  }
 0x1a9   : > { %726 = dma.vmem_to_hbm [thread:$0]  (%p1362_p2), %s1450_s28, 256, %s1447_s1, %s515_s7, %s1138_s12, %s1139_s26, %s1140_s11  }
 0x1aa PF: > { %s1568_s27 = sld [smem:[#allocation14_spill]]  ;;  %p743_p6 = scmp.ge.s32.totalorder %s1126_s25, 2 }
 0x1ab   : > { %p1569_p5 = scmp.ne.s32.totalorder %s1558_s15, 0 }
 0x1ad   : > { %p739_p10 = pnand %p743_p6, %p1569_p5 }
 0x1af   : > { %p740_p9 = pneg %p739_p10 }
 0x1b0   : > { %s546_s13 = sand.u32 1, %s1568_s27  }
 0x1b1   : > { %s547_s8 = scalar_lea.sflag [#allocation5], %s546_s13 }
 0x1b2   : > { %1069 = dma.done.wait (%p740_p9), %s547_s8, 256  }
 0x1b3   : > { %1071 = vsyncadd (%p740_p9), %s547_s8, 4294967040  ;;  %s22_s25 = sadd.s32 1, %s1126_s25   ;;  %s1571_s12 = sld [smem:[#allocation15_spill]] }
 0x1b4   : > { %p1480_p8 = scmp.ge.s32.totalorder %s22_s25, 6   ;;  %s1572_s5 = sld [smem:[#allocation18_spill]] }
 0x1b5   : > { %s1573_s1 = sld [smem:[#allocation19_spill]]  ;;  %s1574_s13 = smov %s1082_s14 }
 0x1b6   : > { %s1575_s14 = smov %s1349_s30  ;;  %s1576_s15 = smov %s1090_s16 }
 0x1b7   : > { %s1577_s16 = smov %s1094_s17  ;;  %s1578_s17 = smov %s1267_s10 }
 0x1b8   : > { %s1579_s18 = smov %s1102_s19  ;;  %s1580_s19 = smov %s1106_s20 }
 0x1b9   : > { %s1581_s20 = smov %s1304_s9  ;;  %s1582_s21 = smov %s1118_s23 }
 0x1ba   : > { %s1583_s22 = smov %s1122_s24  ;;  %s1584_s23 = smov %s1572_s5 }
 0x1bb   : > { %s1585_s24 = smov %s1573_s1  ;;  %21 = sbr.rel (!%p1480_p8) target bundleno = 17 (0x11), region = 113 }
 0x1c0   :  { %552 = vsyncpa [#allocation4], 1 }
 0x1c1   :  { %554 = vsyncpa [#allocation4 + $0x1], 1 }
 0x1c2   :  { %555 = vsyncpa [#allocation7], 1 }
 0x1c3   :  { %557 = vsyncpa [#allocation7 + $0x1], 1 }
 0x1c4   :  { %558 = vsyncpa [#allocation5], 1 }
 0x1c5   :  { %560 = vsyncpa [#allocation5 + $0x1], 1 }

</bundles_post_ra>
